<compile_context>
chip_gen: v7x
topology: tpu7x:2x2x1
jax: 0.10.0
libtpu: 0.0.40
codegen_flags: <defaults>
</compile_context>

<pallas_src>
import itertools
from functools import partial

import numpy as np
import jax
import jax.numpy as jnp
from jax.experimental import pallas as pl
from jax.experimental.pallas import tpu as pltpu


def _round_up(x, m):
    return ((x + m - 1) // m) * m


# ----------------------------------------------------------------------------
# Pallas kernel: fused  (gathered_bf16 @ W_bf16) -> f32 acc -> +bias -> ReLU
# BN scale is folded into the bf16 weights host-side; the bias stays f32 and is
# applied on the f32 accumulator before the ReLU.
# ----------------------------------------------------------------------------
def _fused_conv_bn_relu_kernel(g_ref, w_ref, bias_ref, o_ref):
    acc = jnp.dot(g_ref[...], w_ref[...], preferred_element_type=jnp.float32)
    o_ref[...] = jnp.maximum(acc + bias_ref[...], 0.0).astype(o_ref.dtype)


def fused_subm_conv_bn_relu(gathered, w_flat, bn_bias, tm):
    """gathered: (n_pad, kc) bf16 with n_pad % tm == 0.
    w_flat: (kc, c_out) bf16 (BN scale folded in).  bn_bias: (1, c_out) f32.
    Returns (n_pad, c_out) bf16.  NOTE: padded rows come out as relu(bias),
    not zero — callers must never gather rows >= the true row count."""
    n_pad, kc = gathered.shape
    c_out = w_flat.shape[1]
    assert n_pad % tm == 0 and tm % 8 == 0
    cost = pl.CostEstimate(
        flops=2 * n_pad * kc * c_out,
        transcendentals=0,
        bytes_accessed=(n_pad * kc * 2          # im2col read (bf16)
                        + kc * c_out * 2        # weights (bf16, resident)
                        + c_out * 4             # bias (f32, resident)
                        + n_pad * c_out * 2),   # output write (bf16)
    )
    return pl.pallas_call(
        _fused_conv_bn_relu_kernel,
        out_shape=jax.ShapeDtypeStruct((n_pad, c_out), jnp.bfloat16),
        grid_spec=pltpu.PrefetchScalarGridSpec(
            num_scalar_prefetch=0,
            grid=(n_pad // tm,),
            in_specs=[
                # Last dim of every block equals the full array dim, so the
                # (8,128) divisibility rule does not apply even for kc=432/216/72.
                pl.BlockSpec((tm, kc), lambda i: (i, 0)),
                pl.BlockSpec((kc, c_out), lambda i: (0, 0)),   # resident
                pl.BlockSpec((1, c_out), lambda i: (0, 0)),    # resident
            ],
            out_specs=pl.BlockSpec((tm, c_out), lambda i: (i, 0)),
        ),
        # Row tiles are fully independent -> "parallel" lets v7x's 2 TCs split
        # the grid; harmless on single-TC v5e/v6e.
        compiler_params=pltpu.CompilerParams(
            dimension_semantics=("parallel",)),
        cost_estimate=cost,
    )(gathered, w_flat, bn_bias)


# ----------------------------------------------------------------------------
# Row-tiling policy (feedback items 2/3/7)
# ----------------------------------------------------------------------------
_ROW_QUANTUM = 128   # row-pad quantum: bounds pad waste, keeps tiles 8-aligned
_TM_MAX = 2048       # rows per tile: amortizes ~0.35us/step overhead; at
                     # kc=432 bf16 that's ~1.7MiB/block, tiny vs VMEM even on v7x


def _choose_row_tiling(n):
    """Returns (n_pad, tm): n_pad decoupled from tm (waste bounded by the
    quantum-level search), >=2 tiles when possible (v7x two-TC split)."""
    n_pad = _round_up(max(n, 1), _ROW_QUANTUM)
    units = n_pad // _ROW_QUANTUM
    if units == 1:
        return n_pad, n_pad
    min_tiles = max(2, -(-n_pad // _TM_MAX))
    min_tiles = min(min_tiles, units)
    best = None
    for t in range(min_tiles, min(units, 2 * min_tiles) + 1):
        padded_units = _round_up(units, t)
        if best is None or padded_units < best[0]:
            best = (padded_units, t)
    padded_units, tiles = best
    n_pad = padded_units * _ROW_QUANTUM
    return n_pad, n_pad // tiles


# ----------------------------------------------------------------------------
# Rulebook construction (host) and gather (XLA, inside the jitted pipeline)
# ----------------------------------------------------------------------------
def _build_subm_rulebook(coords, offsets, n_pad):
    """coords: (N, 1+d) int array, col 0 = batch index.  Returns an
    (n_pad, K) int32 neighbor table (index into coords; -1 = inactive / pad).
    Rows [N, n_pad) are all -1, so the gathered im2col is born row-padded."""
    # TODO(synk): spconv resolves duplicate coordinates (e.g. several voxels
    # projecting to the same pixel) via its GPU hash table; duplicates resolve
    # to the first occurrence here, which can differ for the 2D branch.
    coords = np.asarray(coords)
    table = {}
    for i, c in enumerate(map(tuple, coords.tolist())):
        if c not in table:
            table[c] = i
    n, k = coords.shape[0], len(offsets)
    nb = np.full((n_pad, k), -1, dtype=np.int32)
    offs = np.asarray(offsets, dtype=np.int64)
    for i in range(n):
        base = coords[i]
        for ki in range(k):
            key = (int(base[0]),) + tuple(int(v) for v in (base[1:] + offs[ki]))
            nb[i, ki] = table.get(key, -1)
    # Every real neighbor index must point at a real row (< n): padded rows
    # [n, n_pad) of each layer output hold relu(bias), not zeros, and must
    # never be gathered.
    assert nb.max() < n
    return nb


def _gather_rows(table_bf16, nb_idx):
    """table_bf16: (R, C); nb_idx: (n_pad, K) int32 (-1 -> zero row).
    Returns the (n_pad, K*C) bf16 im2col tensor (XLA gather; see header TODO)."""
    r, c = table_bf16.shape
    table = jnp.concatenate(
        [table_bf16, jnp.zeros((1, c), table_bf16.dtype)], axis=0)
    idx = jnp.where(nb_idx < 0, r, nb_idx)
    return jnp.take(table, idx, axis=0).reshape(nb_idx.shape[0], -1)


# ----------------------------------------------------------------------------
# Jitted device pipeline: 4 gathers + 4 fused conv/BN/ReLU kernels + concat
# ----------------------------------------------------------------------------
@partial(jax.jit, static_argnames=("tm",))
def _device_forward(features_f32, nb3, nb2, params, *, tm):
    (w31, b31, w32, b32, w21, b21, w22, b22) = params
    n = features_f32.shape[0]
    feats = features_f32.astype(jnp.bfloat16)    # bf16 everywhere off the acc

    # --- 3D submanifold convs (share the same active-index set) ---
    h1 = fused_subm_conv_bn_relu(_gather_rows(feats, nb3), w31, b31, tm)
    # Padded rows [n, n_pad) of h* hold relu(bias); every subsequent gather
    # uses only the first n rows and rulebook indices are < n (asserted).
    h2 = fused_subm_conv_bn_relu(_gather_rows(h1[:n], nb3), w32, b32, tm)

    # --- 2D submanifold convs on the projected sparse tensor ---
    h3 = fused_subm_conv_bn_relu(_gather_rows(h2[:n], nb2), w21, b21, tm)
    h4 = fused_subm_conv_bn_relu(_gather_rows(h3[:n], nb2), w22, b22, tm)

    # --- replace_feature(d3_feat2, cat([d3_feat2, d2_feat2], -1)) ---
    return jnp.concatenate([h2[:n], h4[:n]], axis=-1).astype(jnp.float32)


def _reference_forward(features_f32, nb3, nb2, params):
    """Pure-JAX reference with the same bf16 rounding points (XLA matmuls)."""
    (w31, b31, w32, b32, w21, b21, w22, b22) = params
    n = features_f32.shape[0]

    def layer(g, w, b):
        acc = jnp.dot(g.astype(jnp.float32), w.astype(jnp.float32))
        return jnp.maximum(acc + b, 0.0).astype(jnp.bfloat16)

    f = features_f32.astype(jnp.bfloat16)
    h1 = layer(_gather_rows(f, nb3), w31, b31)
    h2 = layer(_gather_rows(h1[:n], nb3), w32, b32)
    h3 = layer(_gather_rows(h2[:n], nb2), w21, b21)
    h4 = layer(_gather_rows(h3[:n], nb2), w22, b22)
    return jnp.concatenate([h2[:n], h4[:n]], axis=-1).astype(jnp.float32)


# ----------------------------------------------------------------------------
# index2points / index2uv (geometry glue, numpy) + synthetic calibration
# ----------------------------------------------------------------------------
def index2points_np(indices, pts_range=(0, -40, -3, 70.4, 40, 1),
                    voxel_size=(0.05, 0.05, 0.05), stride=8):
    vs = np.array(voxel_size, dtype=np.float64) * stride
    mins = np.array(pts_range[:3], dtype=np.float64) + vs / 2
    idx_f = indices.astype(np.float64)
    out = idx_f.copy()
    out[:, 1] = idx_f[:, 3] * vs[0] + mins[0]
    out[:, 2] = idx_f[:, 2] * vs[1] + mins[1]
    out[:, 3] = idx_f[:, 1] * vs[2] + mins[2]
    return out


class SimpleCalib:
    """Synthetic pinhole calibration: lidar (x fwd, y left, z up) -> rect cam."""

    def __init__(self, fu=700.0, fv=700.0, cu=700.0, cv=300.0):
        self.fu, self.fv, self.cu, self.cv = fu, fv, cu, cv

    def lidar_to_rect(self, pts):
        x, y, z = pts[:, 0], pts[:, 1], pts[:, 2]
        return np.stack([-y, -z, x], axis=1)

    def rect_to_img(self, pts_rect):
        z = np.maximum(pts_rect[:, 2], 1e-3)
        u = self.fu * pts_rect[:, 0] / z + self.cu
        v = self.fv * pts_rect[:, 1] / z + self.cv
        return np.stack([u, v], axis=1), pts_rect[:, 2]


def index2uv_np(indices, batch_size, calib, stride):
    n = indices.shape[0]
    new_uv = np.zeros((n, 3), dtype=np.int64)
    depth = np.zeros((n, 1), dtype=np.float32)
    for b_i in range(batch_size):
        m = indices[:, 0] == b_i
        cur_pts = index2points_np(indices[m], stride=stride)[:, 1:4]
        pts_rect = calib[b_i].lidar_to_rect(cur_pts)
        pts_img, pts_depth = calib[b_i].rect_to_img(pts_rect)
        new_uv[m, 1:3] = pts_img.astype(np.int64)  # .int() truncation
        depth[m, 0] = pts_depth.astype(np.float32)
    new_uv[:, 0] = indices[:, 0]
    new_uv[:, 1] = np.clip(new_uv[:, 1], 0, 1400 - 1) // stride
    new_uv[:, 2] = np.clip(new_uv[:, 2], 0, 600 - 1) // stride
    return new_uv, depth


# ----------------------------------------------------------------------------
# NRConvBlock (stride=1, conv_depth=False path of the PyTorch module)
# ----------------------------------------------------------------------------
_OFFS3D = list(itertools.product((-1, 0, 1), repeat=3))   # 27 (dz, dy, dx)
_OFFS2D = list(itertools.product((-1, 0, 1), repeat=2))   # 9  (du, dv)


def _make_conv_bn(key, kvol, c_in, c_out):
    """Random conv weight (kvol*c_in, c_out), BN (eps=1e-3, pcdet norm_fn)
    folded: returns (w_bf16, bias_f32)."""
    kw, kg, kb, km = jax.random.split(key, 4)
    w = jax.random.normal(kw, (kvol * c_in, c_out), jnp.float32) \
        / np.sqrt(kvol * c_in)
    gamma = 1.0 + 0.1 * jax.random.normal(kg, (c_out,), jnp.float32)
    beta = 0.1 * jax.random.normal(kb, (c_out,), jnp.float32)
    mean = 0.1 * jax.random.normal(km, (c_out,), jnp.float32)
    var = jnp.ones((c_out,), jnp.float32)
    inv = gamma / jnp.sqrt(var + 1e-3)          # BatchNorm1d eps=0.001 (pcdet)
    # NOTE: folding BN scale into bf16 weights (plus bf16 activations) drifts
    # slightly vs the f32 PyTorch reference; checked to <=5e-2 in __main__.
    w_folded = (w * inv[None, :]).astype(jnp.bfloat16)
    bias = (beta - mean * inv)[None, :]          # stays float32
    return w_folded, bias


class NRConvBlockPallas:
    def __init__(self, key, input_c=16, output_c=16, stride=1,
                 conv_depth=False):
        assert stride == 1 and not conv_depth
        c1, c2 = input_c, output_c
        half = c2 // 2
        keys = jax.random.split(key, 4)
        self.w_d3_1, self.b_d3_1 = _make_conv_bn(keys[0], 27, c1, half)
        self.w_d3_2, self.b_d3_2 = _make_conv_bn(keys[1], 27, half, half)
        self.w_d2_1, self.b_d2_1 = _make_conv_bn(keys[2], 9, half, half)
        self.w_d2_2, self.b_d2_2 = _make_conv_bn(keys[3], 9, half, half)
        self.output_c = c2

    def params(self):
        return (self.w_d3_1, self.b_d3_1, self.w_d3_2, self.b_d3_2,
                self.w_d2_1, self.b_d2_1, self.w_d2_2, self.b_d2_2)

    def forward(self, features, indices, batch_size, calib, stride,
                x_trans_train=None, trans_param=None):
        indices_np = np.asarray(indices)
        n = int(features.shape[0])
        n_pad, tm = _choose_row_tiling(n)

        # Host-side geometry / rulebook work is hoisted ABOVE any device launch
        # (both rulebooks depend only on `indices`), so it never serializes
        # between the 3D and 2D conv groups; the whole device pipeline is then
        # a single jitted call.
        nb3 = _build_subm_rulebook(indices_np, _OFFS3D, n_pad)
        uv_coords, _depth = index2uv_np(indices_np, batch_size, calib, stride)
        nb2 = _build_subm_rulebook(uv_coords, _OFFS2D, n_pad)

        out_features = _device_forward(
            jnp.asarray(features, jnp.float32),
            jnp.asarray(nb3), jnp.asarray(nb2),
            self.params(), tm=tm)
        return out_features, indices


# ----------------------------------------------------------------------------
# Demo
# ----------------------------------------------------------------------------
if __name__ == "__main__":
    key = jax.random.PRNGKey(0)
    k_feat, k_idx0, k_idx1, k_params = jax.random.split(key, 4)

    batch_size = 2
    D, H, W = 4, 16, 16
    input_c, output_c = 16, 16
    n_per_batch = 32
    stride = 8  # voxel-grid stride used by index2uv

    # unique active voxel indices per batch: (batch, z, y, x)
    idx_list = []
    for b, k in enumerate((k_idx0, k_idx1)):
        flat = jax.random.choice(k, D * H * W, shape=(n_per_batch,),
                                 replace=False)
        flat = np.asarray(flat).astype(np.int64)
        z, rem = flat // (H * W), flat % (H * W)
        y, x = rem // W, rem % W
        idx_list.append(np.stack([np.full_like(z, b), z, y, x], axis=1))
    indices = np.concatenate(idx_list, axis=0)          # (64, 4) int
    n_active = indices.shape[0]

    features = jax.random.normal(k_feat, (n_active, input_c), jnp.float32)

    calib = [SimpleCalib() for _ in range(batch_size)]
    block = NRConvBlockPallas(k_params, input_c=input_c, output_c=output_c,
                              stride=1, conv_depth=False)

    out_feat, out_idx = block.forward(features, indices, batch_size, calib,
                                      stride, x_trans_train=None,
                                      trans_param=None)
    out_feat = jax.block_until_ready(out_feat)

    assert out_feat.shape == (n_active, output_c), out_feat.shape
    assert bool(jnp.all(jnp.isfinite(out_feat)))

    # Numerical sanity check vs a pure-JAX reference with identical bf16
    # rounding points (only matmul accumulation order differs).
    n_pad, _tm = _choose_row_tiling(n_active)
    nb3 = _build_subm_rulebook(indices, _OFFS3D, n_pad)
    uv, _ = index2uv_np(indices, batch_size, calib, stride)
    nb2 = _build_subm_rulebook(uv, _OFFS2D, n_pad)
    ref = _reference_forward(features, jnp.asarray(nb3), jnp.asarray(nb2),
                             block.params())
    ref = jax.block_until_ready(ref)
    assert bool(jnp.allclose(out_feat, ref, atol=5e-2, rtol=5e-2)), \
        float(jnp.max(jnp.abs(out_feat - ref)))

    print("KERNEL_OK")
</pallas_src>

<mosaic_0001>
module attributes {stable_mosaic.version = 11 : i64} {
  func.func @_fused_conv_bn_relu_kernel(%arg0: i32, %arg1: memref<128x432xbf16, #tpu.memory_space<vmem>>, %arg2: memref<432x8xbf16, #tpu.memory_space<vmem>>, %arg3: memref<1x8xf32, #tpu.memory_space<vmem>>, %arg4: memref<128x8xbf16, #tpu.memory_space<vmem>>) attributes {dimension_semantics = [#tpu.dimension_semantics<parallel>], iteration_bounds = array<i64: 1>, scalar_prefetch = 0 : i64, scratch_operands = 0 : i64, tpu.core_type = #tpu.core_type<tc>, window_params = [{transform_indices = @transform_0, window_bounds = array<i64: 128, 432>}, {pipeline_mode = #tpu.pipeline_mode<synchronous>, transform_indices = @transform_1, window_bounds = array<i64: 432, 8>}, {pipeline_mode = #tpu.pipeline_mode<synchronous>, transform_indices = @transform_2, window_bounds = array<i64: 1, 8>}, {transform_indices = @transform_3, window_bounds = array<i64: 128, 8>}]} {
    %c0 = arith.constant 0 : index
    %c0_0 = arith.constant 0 : index
    %0 = vector.load %arg1[%c0, %c0_0] : memref<128x432xbf16, #tpu.memory_space<vmem>>, vector<128x432xbf16>
    %c0_1 = arith.constant 0 : index
    %c0_2 = arith.constant 0 : index
    %1 = vector.load %arg2[%c0_1, %c0_2] : memref<432x8xbf16, #tpu.memory_space<vmem>>, vector<432x8xbf16>
    %cst = arith.constant dense<0.000000e+00> : vector<128x8xf32>
    %2 = tpu.matmul %0, %1, %cst {dimension_numbers = #tpu.dot_dimension_numbers<[1], [0], [0], [1], [0, 0, 1, 1], [], []>} : vector<128x432xbf16>, vector<432x8xbf16>, vector<128x8xf32> -> vector<128x8xf32>
    %c0_3 = arith.constant 0 : index
    %c0_4 = arith.constant 0 : index
    %3 = vector.load %arg3[%c0_3, %c0_4] : memref<1x8xf32, #tpu.memory_space<vmem>>, vector<1x8xf32>
    %4 = vector.broadcast %3 : vector<1x8xf32> to vector<128x8xf32>
    %5 = arith.addf %2, %4 : vector<128x8xf32>
    %cst_5 = arith.constant 0.000000e+00 : f32
    %6 = vector.broadcast %cst_5 : f32 to vector<128x8xf32>
    %7 = arith.maximumf %5, %6 : vector<128x8xf32>
    %8 = arith.truncf %7 : vector<128x8xf32> to vector<128x8xbf16>
    %c0_6 = arith.constant 0 : index
    %c0_7 = arith.constant 0 : index
    %9 = vector.load %arg4[%c0_6, %c0_7] : memref<128x8xbf16, #tpu.memory_space<vmem>>, vector<128x8xbf16>
    tpu.vector_store %arg4[%c0_6, %c0_7], %8 {strides = array<i32>} : memref<128x8xbf16, #tpu.memory_space<vmem>>, vector<128x8xbf16>,
    return
  }
  func.func @transform_0(%arg0: i32) -> (i32, i32) {
    %c0_i32 = arith.constant 0 : i32
    %c0_i32_0 = arith.constant 0 : i32
    return %arg0, %c0_i32 : i32, i32
  }
  func.func @transform_1(%arg0: i32) -> (i32, i32) {
    %c0_i32 = arith.constant 0 : i32
    %c0_i32_0 = arith.constant 0 : i32
    %c0_i32_1 = arith.constant 0 : i32
    return %c0_i32, %c0_i32_0 : i32, i32
  }
  func.func @transform_2(%arg0: i32) -> (i32, i32) {
    %c0_i32 = arith.constant 0 : i32
    %c0_i32_0 = arith.constant 0 : i32
    %c0_i32_1 = arith.constant 0 : i32
    return %c0_i32, %c0_i32_0 : i32, i32
  }
  func.func @transform_3(%arg0: i32) -> (i32, i32) {
    %c0_i32 = arith.constant 0 : i32
    %c0_i32_0 = arith.constant 0 : i32
    return %arg0, %c0_i32 : i32, i32
  }
}

module attributes {stable_mosaic.version = 11 : i64} {
  func.func @_fused_conv_bn_relu_kernel(%arg0: i32, %arg1: memref<128x216xbf16, #tpu.memory_space<vmem>>, %arg2: memref<216x8xbf16, #tpu.memory_space<vmem>>, %arg3: memref<1x8xf32, #tpu.memory_space<vmem>>, %arg4: memref<128x8xbf16, #tpu.memory_space<vmem>>) attributes {dimension_semantics = [#tpu.dimension_semantics<parallel>], iteration_bounds = array<i64: 1>, scalar_prefetch = 0 : i64, scratch_operands = 0 : i64, tpu.core_type = #tpu.core_type<tc>, window_params = [{transform_indices = @transform_0, window_bounds = array<i64: 128, 216>}, {pipeline_mode = #tpu.pipeline_mode<synchronous>, transform_indices = @transform_1, window_bounds = array<i64: 216, 8>}, {pipeline_mode = #tpu.pipeline_mode<synchronous>, transform_indices = @transform_2, window_bounds = array<i64: 1, 8>}, {transform_indices = @transform_3, window_bounds = array<i64: 128, 8>}]} {
    %c0 = arith.constant 0 : index
    %c0_0 = arith.constant 0 : index
    %0 = vector.load %arg1[%c0, %c0_0] : memref<128x216xbf16, #tpu.memory_space<vmem>>, vector<128x216xbf16>
    %c0_1 = arith.constant 0 : index
    %c0_2 = arith.constant 0 : index
    %1 = vector.load %arg2[%c0_1, %c0_2] : memref<216x8xbf16, #tpu.memory_space<vmem>>, vector<216x8xbf16>
    %cst = arith.constant dense<0.000000e+00> : vector<128x8xf32>
    %2 = tpu.matmul %0, %1, %cst {dimension_numbers = #tpu.dot_dimension_numbers<[1], [0], [0], [1], [0, 0, 1, 1], [], []>} : vector<128x216xbf16>, vector<216x8xbf16>, vector<128x8xf32> -> vector<128x8xf32>
    %c0_3 = arith.constant 0 : index
    %c0_4 = arith.constant 0 : index
    %3 = vector.load %arg3[%c0_3, %c0_4] : memref<1x8xf32, #tpu.memory_space<vmem>>, vector<1x8xf32>
    %4 = vector.broadcast %3 : vector<1x8xf32> to vector<128x8xf32>
    %5 = arith.addf %2, %4 : vector<128x8xf32>
    %cst_5 = arith.constant 0.000000e+00 : f32
    %6 = vector.broadcast %cst_5 : f32 to vector<128x8xf32>
    %7 = arith.maximumf %5, %6 : vector<128x8xf32>
    %8 = arith.truncf %7 : vector<128x8xf32> to vector<128x8xbf16>
    %c0_6 = arith.constant 0 : index
    %c0_7 = arith.constant 0 : index
    %9 = vector.load %arg4[%c0_6, %c0_7] : memref<128x8xbf16, #tpu.memory_space<vmem>>, vector<128x8xbf16>
    tpu.vector_store %arg4[%c0_6, %c0_7], %8 {strides = array<i32>} : memref<128x8xbf16, #tpu.memory_space<vmem>>, vector<128x8xbf16>,
    return
  }
  func.func @transform_0(%arg0: i32) -> (i32, i32) {
    %c0_i32 = arith.constant 0 : i32
    %c0_i32_0 = arith.constant 0 : i32
    return %arg0, %c0_i32 : i32, i32
  }
  func.func @transform_1(%arg0: i32) -> (i32, i32) {
    %c0_i32 = arith.constant 0 : i32
    %c0_i32_0 = arith.constant 0 : i32
    %c0_i32_1 = arith.constant 0 : i32
    return %c0_i32, %c0_i32_0 : i32, i32
  }
  func.func @transform_2(%arg0: i32) -> (i32, i32) {
    %c0_i32 = arith.constant 0 : i32
    %c0_i32_0 = arith.constant 0 : i32
    %c0_i32_1 = arith.constant 0 : i32
    return %c0_i32, %c0_i32_0 : i32, i32
  }
  func.func @transform_3(%arg0: i32) -> (i32, i32) {
    %c0_i32 = arith.constant 0 : i32
    %c0_i32_0 = arith.constant 0 : i32
    return %arg0, %c0_i32 : i32, i32
  }
}

module attributes {stable_mosaic.version = 11 : i64} {
  func.func @_fused_conv_bn_relu_kernel(%arg0: i32, %arg1: memref<128x72xbf16, #tpu.memory_space<vmem>>, %arg2: memref<72x8xbf16, #tpu.memory_space<vmem>>, %arg3: memref<1x8xf32, #tpu.memory_space<vmem>>, %arg4: memref<128x8xbf16, #tpu.memory_space<vmem>>) attributes {dimension_semantics = [#tpu.dimension_semantics<parallel>], iteration_bounds = array<i64: 1>, scalar_prefetch = 0 : i64, scratch_operands = 0 : i64, tpu.core_type = #tpu.core_type<tc>, window_params = [{transform_indices = @transform_0, window_bounds = array<i64: 128, 72>}, {pipeline_mode = #tpu.pipeline_mode<synchronous>, transform_indices = @transform_1, window_bounds = array<i64: 72, 8>}, {pipeline_mode = #tpu.pipeline_mode<synchronous>, transform_indices = @transform_2, window_bounds = array<i64: 1, 8>}, {transform_indices = @transform_3, window_bounds = array<i64: 128, 8>}]} {
    %c0 = arith.constant 0 : index
    %c0_0 = arith.constant 0 : index
    %0 = vector.load %arg1[%c0, %c0_0] : memref<128x72xbf16, #tpu.memory_space<vmem>>, vector<128x72xbf16>
    %c0_1 = arith.constant 0 : index
    %c0_2 = arith.constant 0 : index
    %1 = vector.load %arg2[%c0_1, %c0_2] : memref<72x8xbf16, #tpu.memory_space<vmem>>, vector<72x8xbf16>
    %cst = arith.constant dense<0.000000e+00> : vector<128x8xf32>
    %2 = tpu.matmul %0, %1, %cst {dimension_numbers = #tpu.dot_dimension_numbers<[1], [0], [0], [1], [0, 0, 1, 1], [], []>} : vector<128x72xbf16>, vector<72x8xbf16>, vector<128x8xf32> -> vector<128x8xf32>
    %c0_3 = arith.constant 0 : index
    %c0_4 = arith.constant 0 : index
    %3 = vector.load %arg3[%c0_3, %c0_4] : memref<1x8xf32, #tpu.memory_space<vmem>>, vector<1x8xf32>
    %4 = vector.broadcast %3 : vector<1x8xf32> to vector<128x8xf32>
    %5 = arith.addf %2, %4 : vector<128x8xf32>
    %cst_5 = arith.constant 0.000000e+00 : f32
    %6 = vector.broadcast %cst_5 : f32 to vector<128x8xf32>
    %7 = arith.maximumf %5, %6 : vector<128x8xf32>
    %8 = arith.truncf %7 : vector<128x8xf32> to vector<128x8xbf16>
    %c0_6 = arith.constant 0 : index
    %c0_7 = arith.constant 0 : index
    %9 = vector.load %arg4[%c0_6, %c0_7] : memref<128x8xbf16, #tpu.memory_space<vmem>>, vector<128x8xbf16>
    tpu.vector_store %arg4[%c0_6, %c0_7], %8 {strides = array<i32>} : memref<128x8xbf16, #tpu.memory_space<vmem>>, vector<128x8xbf16>,
    return
  }
  func.func @transform_0(%arg0: i32) -> (i32, i32) {
    %c0_i32 = arith.constant 0 : i32
    %c0_i32_0 = arith.constant 0 : i32
    return %arg0, %c0_i32 : i32, i32
  }
  func.func @transform_1(%arg0: i32) -> (i32, i32) {
    %c0_i32 = arith.constant 0 : i32
    %c0_i32_0 = arith.constant 0 : i32
    %c0_i32_1 = arith.constant 0 : i32
    return %c0_i32, %c0_i32_0 : i32, i32
  }
  func.func @transform_2(%arg0: i32) -> (i32, i32) {
    %c0_i32 = arith.constant 0 : i32
    %c0_i32_0 = arith.constant 0 : i32
    %c0_i32_1 = arith.constant 0 : i32
    return %c0_i32, %c0_i32_0 : i32, i32
  }
  func.func @transform_3(%arg0: i32) -> (i32, i32) {
    %c0_i32 = arith.constant 0 : i32
    %c0_i32_0 = arith.constant 0 : i32
    return %arg0, %c0_i32 : i32, i32
  }
}

</mosaic_0001>

<bundles_post_ra>
// kernel: _device_forward.4
= control target key start
LH: loop header
LB: loop body
LE: loop exit
PB: predicated region body
PF: predicated region fallthrough
CT: control target
= control target key end

     0   :  { %v982_v0 = vmov 0   ;;  %vm422_vm0 = vcmask 392192   ;;  %vm721_vm1 = vcmask 60416   ;;  %s1284_s1 = inlined_call_operand.vmem [shape: bf16[432,8], index: 1, kind: input, shape index: {}]   ;;  %s1285_s0 = inlined_call_operand.vmem [shape: bf16[128,432], index: 0, kind: input, shape index: {}]   ;;  %s1286_s2 = inlined_call_operand.vmem [shape: f32[1,8], index: 2, kind: input, shape index: {}]   ;;  %s1287_s3 = inlined_call_operand.vmem [shape: bf16[128,8], index: 3, kind: output, shape index: {}]  }
   0x1   :  { %544 = vmatprep.subr.bf16.mxu1 %v982_v0  ;;  %v907_v1 = vld [vmem:[%s1284_s1 + $0x80] sm:$0xff]   ;;  %v910_v4 = vld [vmem:[%s1284_s1 + $0x88] sm:$0xff]   ;;  %v913_v7 = vld [vmem:[%s1284_s1 + $0x90] sm:$0xff]  }
   0x2   :  { %v908_v2 = vld [vmem:[%s1284_s1 + $0x40] sm:$0xff]   ;;  %545 = vmatpush1.bf16.msra.mxu1 %v907_v1  ;;  %v911_v5 = vld [vmem:[%s1284_s1 + $0x48] sm:$0xff]   ;;  %v914_v8 = vld [vmem:[%s1284_s1 + $0x50] sm:$0xff]  }
   0x3   :  { %v909_v3 = vld [vmem:[%s1284_s1] sm:$0xff]   ;;  %842 = vmatprep.subr.bf16.mxu0 %v908_v2  ;;  %546 = vmatprep.subr.bf16.mxu1 %v982_v0  ;;  %v912_v6 = vld [vmem:[%s1284_s1 + $0x8] sm:$0xff]   ;;  %v915_v9 = vld [vmem:[%s1284_s1 + $0x10] sm:$0xff]  }
   0x4   :  { %843 = vmatpush3.bf16.msra.mxu0 %v909_v3  ;;  %v916_v10 = vld [vmem:[%s1284_s1 + $0x98] sm:$0xff]   ;;  %v920_v13 = vld [vmem:[%s1284_s1 + $0x60] sm:$0xff]   ;;  %v923_v16 = vld [vmem:[%s1284_s1 + $0x68] sm:$0xff]  }
   0x5   :  { %844 = vmatprep.subr.bf16.mxu0 %v911_v5  ;;  %v917_v11 = vld [vmem:[%s1284_s1 + $0x58] sm:$0xff]   ;;  %v919_v14 = vld [vmem:[%s1284_s1 + $0xa0] sm:$0xff]   ;;  %v922_v17 = vld [vmem:[%s1284_s1 + $0xa8] sm:$0xff]  }
   0x6   :  { %547 = vmatpush1.bf16.msra.mxu1 %v910_v4  ;;  %v918_v12 = vld [vmem:[%s1284_s1 + $0x18] sm:$0xff]   ;;  %v921_v15 = vld [vmem:[%s1284_s1 + $0x20] sm:$0xff]   ;;  %v924_v18 = vld [vmem:[%s1284_s1 + $0x28] sm:$0xff]  }
   0x7   :  { %548 = vmatprep.subr.bf16.mxu1 %v982_v0  ;;  %v926_v19 = vld [vmem:[%s1284_s1 + $0x70] sm:$0xff]   ;;  %v928_v22 = vld [vmem:[%s1284_s1 + $0xb8] sm:$0xff]   ;;  %v931_v26 = vld [vmem:[%s1284_s1 + $0xc0] sm:$0xff]  }
   0x8   :  { %845 = vmatpush3.bf16.msra.mxu0 %v912_v6  ;;  %v925_v20 = vld [vmem:[%s1284_s1 + $0xb0] sm:$0xff]   ;;  %v929_v23 = vld [vmem:[%s1284_s1 + $0x78] sm:$0xff]   ;;  %v935_v30 = vld [vmem:[%s1284_s1 + $0xc8] sm:$0xff]  }
   0x9   :  { %846 = vmatprep.subr.bf16.mxu0 %v914_v8  ;;  %v927_v21 = vld [vmem:[%s1284_s1 + $0x30] sm:$0xff]   ;;  %v930_v25 = vld [vmem:[%s1284_s1 + $0x38] sm:$0xff]   ;;  %v1202_v2 = vld [vmem:[%s1286_s2] ss:$0 sm:$0xff] }
   0xa   :  { %549 = vmatpush1.bf16.msra.mxu1 %v913_v7  ;;  %v934_v24 = vld [vmem:[%s1285_s0 + $0x4] ss:$16 sps:$4 sm:$0xff]   ;;  %v941_v27 = vld [vmem:[%s1285_s0 + $0xc] ss:$16 sps:$4 sm:$0xff]   ;;  %v932_v28 = vld [vmem:[%s1285_s0] ss:$16 sps:$4 sm:$0xff]  }
   0xb   :  { %550 = vmatprep.subr.bf16.mxu1 %v982_v0  ;;  %479 = vmatprep.mubr.bf16.mxu0 %v934_v24  ;;  %v937_v29 = vld [vmem:[%s1285_s0 + $0x24] ss:$16 sps:$4 sm:$0xff]   ;;  %v942_v32 = vld [vmem:[%s1285_s0 + $0x20] ss:$16 sps:$4 sm:$0xff]   ;;  %v939_v34 = vld [vmem:[%s1285_s0 + $0x8] ss:$16 sps:$4 sm:$0xff]  }
   0xc   :  { %847 = vmatpush3.bf16.msra.mxu0 %v915_v9  ;;  %802 = vmatprep.mubr.msk.bf16.mxu1 %vm422_vm0, %v941_v27  ;;  %v936_v31 = vld [vmem:[%s1284_s1 + $0xd0] sm:$0xff]   ;;  %v945_v35 = vld [vmem:[%s1285_s0 + $0x2c] ss:$16 sps:$4 sm:$0xff]   ;;  %v948_v38 = vld [vmem:[%s1285_s0 + $0x28] ss:$16 sps:$4 sm:$0xff]  }
   0xd   :  { %848 = vmatprep.subr.bf16.mxu0 %v917_v11  ;;  %v943_v33 = vld [vmem:[%s1285_s0 + $0x44] ss:$16 sps:$4 sm:$0xff]   ;;  %v947_v36 = vld [vmem:[%s1285_s0 + $0x40] ss:$16 sps:$4 sm:$0xff]   ;;  %v951_v39 = vld [vmem:[%s1285_s0 + $0x4c] ss:$16 sps:$4 sm:$0xff]  }
   0xe   :  { %551 = vmatpush1.bf16.msra.mxu1 %v916_v10  ;;  %v949_v37 = vld [vmem:[%s1285_s0 + $0x64] ss:$16 sps:$4 sm:$0xff]   ;;  %v953_v40 = vld [vmem:[%s1285_s0 + $0x60] ss:$16 sps:$4 sm:$0xff]   ;;  %v954_v42 = vld [vmem:[%s1285_s0 + $0x48] ss:$16 sps:$4 sm:$0xff]  }
   0xf   :  { %552 = vmatprep.subr.bf16.mxu1 %v982_v0  ;;  %v955_v41 = vld [vmem:[%s1285_s0 + $0x84] ss:$16 sps:$4 sm:$0xff]   ;;  %v957_v43 = vld [vmem:[%s1285_s0 + $0x6c] ss:$16 sps:$4 sm:$0xff]   ;;  %v959_v44 = vld [vmem:[%s1285_s0 + $0x80] ss:$16 sps:$4 sm:$0xff]  }
  0x10   :  { %849 = vmatpush3.bf16.msra.mxu0 %v918_v12  ;;  %v961_v45 = vld [vmem:[%s1285_s0 + $0xa4] ss:$16 sps:$4 sm:$0xff]   ;;  %v960_v46 = vld [vmem:[%s1285_s0 + $0x68] ss:$16 sps:$4 sm:$0xff]   ;;  %v963_v47 = vld [vmem:[%s1285_s0 + $0x8c] ss:$16 sps:$4 sm:$0xff]  }
  0x11   :  { %850 = vmatprep.subr.bf16.mxu0 %v920_v13  ;;  %v965_v48 = vld [vmem:[%s1285_s0 + $0xa0] ss:$16 sps:$4 sm:$0xff]   ;;  %v967_v49 = vld [vmem:[%s1285_s0 + $0xc4] ss:$16 sps:$4 sm:$0xff]   ;;  %v966_v50 = vld [vmem:[%s1285_s0 + $0x88] ss:$16 sps:$4 sm:$0xff]  }
  0x12   :  { %553 = vmatpush1.bf16.msra.mxu1 %v919_v14  ;;  %v969_v51 = vld [vmem:[%s1285_s0 + $0xac] ss:$16 sps:$4 sm:$0xff]   ;;  %v971_v52 = vld [vmem:[%s1285_s0 + $0xc0] ss:$16 sps:$4 sm:$0xff]   ;;  %v973_v53 = vld [vmem:[%s1285_s0 + $0xe4] ss:$16 sps:$4 sm:$0xff]  }
  0x13   :  { %554 = vmatprep.subr.bf16.mxu1 %v982_v0  ;;  %v972_v54 = vld [vmem:[%s1285_s0 + $0xa8] ss:$16 sps:$4 sm:$0xff]   ;;  %v975_v55 = vld [vmem:[%s1285_s0 + $0xcc] ss:$16 sps:$4 sm:$0xff]   ;;  %v977_v56 = vld [vmem:[%s1285_s0 + $0xe0] ss:$16 sps:$4 sm:$0xff]  }
  0x14   :  { %851 = vmatpush3.bf16.msra.mxu0 %v921_v15  ;;  %v978_v57 = vld [vmem:[%s1285_s0 + $0xc8] ss:$16 sps:$4 sm:$0xff]   ;;  %v979_v58 = vld [vmem:[%s1285_s0 + $0xec] ss:$16 sps:$4 sm:$0xff]  }
  0x15   :  { %852 = vmatprep.subr.bf16.mxu0 %v923_v16  ;;  %v981_v59 = vld [vmem:[%s1285_s0 + $0xe8] ss:$16 sps:$4 sm:$0xff]  }
  0x16   :  { %555 = vmatpush1.bf16.msra.mxu1 %v922_v17 }
  0x17   :  { %556 = vmatprep.subr.bf16.mxu1 %v982_v0 }
  0x18   :  { %853 = vmatpush3.bf16.msra.mxu0 %v924_v18 }
  0x19   :  { %854 = vmatprep.subr.bf16.mxu0 %v926_v19 }
  0x1a   :  { %557 = vmatpush1.bf16.msra.mxu1 %v925_v20 }
  0x1b   :  { %558 = vmatprep.subr.bf16.mxu1 %v982_v0 }
  0x1c   :  { %855 = vmatpush3.bf16.msra.mxu0 %v927_v21 }
  0x1d   :  { %856 = vmatprep.subr.bf16.mxu0 %v929_v23 }
  0x1e   :  { %559 = vmatpush1.bf16.msra.mxu1 %v928_v22 }
  0x1f   :  { %560 = vmatprep.subr.bf16.mxu1 %v982_v0 }
  0x20   :  { %857 = vmatpush3.bf16.msra.mxu0 %v930_v25 }
  0x22   :  { %561 = vmatpush1.bf16.msra.mxu1 %v931_v26 }
  0x23   :  { %480 = vmatmul.mubr.bf16.vlgmr.msra.gmra.mrb[0].mxu0 %v932_v28  ;;  %562 = vmatprep.subr.bf16.mxu1 %v982_v0 }
  0x24   :  { %487 = vmatprep.mubr.bf16.mxu0 %v937_v29 }
  0x26   :  { %563 = vmatpush1.bf16.msra.mxu1 %v935_v30 }
  0x27   :  { %564 = vmatprep.subr.bf16.mxu1 %v982_v0 }
  0x2a   :  { %565 = vmatpush1.bf16.msra.mxu1 %v936_v31 }
  0x2b   :  { %488 = vmatmul.mubr.bf16.gmra.mrb[4].mxu0 %v942_v32 }
  0x2c   :  { %495 = vmatprep.mubr.bf16.mxu0 %v943_v33 }
  0x2d   :  { %577 = vmatmul.mubr.bf16.vlgmr.msra.gmra.mrb[0].mxu1 %v939_v34 }
  0x2e   :  { %803 = vmatprep.mubr.msk.bf16.mxu1 %vm422_vm0, %v945_v35 }
  0x33   :  { %496 = vmatmul.mubr.bf16.gmra.mrb[8].mxu0 %v947_v36 }
  0x34   :  { %503 = vmatprep.mubr.bf16.mxu0 %v949_v37 }
  0x35   :  { %585 = vmatmul.mubr.bf16.gmra.mrb[4].mxu1 %v948_v38 }
  0x36   :  { %804 = vmatprep.mubr.msk.bf16.mxu1 %vm422_vm0, %v951_v39 }
  0x3b   :  { %504 = vmatmul.mubr.bf16.gmra.mrb[12].mxu0 %v953_v40 }
  0x3c   :  { %511 = vmatprep.mubr.bf16.mxu0 %v955_v41 }
  0x3d   :  { %593 = vmatmul.mubr.bf16.gmra.mrb[8].mxu1 %v954_v42 }
  0x3e   :  { %805 = vmatprep.mubr.msk.bf16.mxu1 %vm422_vm0, %v957_v43 }
  0x43   :  { %512 = vmatmul.mubr.bf16.gmra.mrb[16].mxu0 %v959_v44 }
  0x44   :  { %519 = vmatprep.mubr.bf16.mxu0 %v961_v45 }
  0x45   :  { %601 = vmatmul.mubr.bf16.gmra.mrb[12].mxu1 %v960_v46 }
  0x46   :  { %806 = vmatprep.mubr.msk.bf16.mxu1 %vm422_vm0, %v963_v47 }
  0x4b   :  { %520 = vmatmul.mubr.bf16.gmra.mrb[20].mxu0 %v965_v48 }
  0x4c   :  { %527 = vmatprep.mubr.bf16.mxu0 %v967_v49 }
  0x4d   :  { %609 = vmatmul.mubr.bf16.gmra.mrb[16].mxu1 %v966_v50 }
  0x4e   :  { %807 = vmatprep.mubr.msk.bf16.mxu1 %vm422_vm0, %v969_v51 }
  0x53   :  { %528 = vmatmul.mubr.bf16.gmra.mrb[24].mxu0 %v971_v52 }
  0x54   :  { %535 = vmatprep.mubr.bf16.mxu0 %v973_v53 }
  0x55   :  { %617 = vmatmul.mubr.bf16.gmra.mrb[20].mxu1 %v972_v54 }
  0x56   :  { %808 = vmatprep.mubr.msk.bf16.mxu1 %vm422_vm0, %v975_v55 }
  0x5b   :  { %536 = vmatmul.mubr.bf16.gmra.mrb[28].mxu0 %v977_v56 }
  0x5d   :  { %625 = vmatmul.mubr.bf16.gmra.mrb[24].mxu1 %v978_v57 }
  0x5e   :  { %809 = vmatprep.mubr.msk.bf16.mxu1 %vm422_vm0, %v979_v58 }
  0x65   :  { %633 = vmatmul.mubr.bf16.gmra.mrb[28].mxu1 %v981_v59 }
  0xf6   :  { %v858_v60 = vpop.f32.mrb[0].mxu0 }
  0xf7   :  { %v859_v61 = vpop.f32.mrb[1].mxu0 }
  0xf8   :  { %v860_v62 = vadd.f32 %v859_v61, %v858_v60  ;;  %v861_v63 = vpop.f32.mrb[2].mxu0 }
  0xf9   :  { %v862_v0 = vpop.f32.mrb[3].mxu0 }
  0xfa   :  { %v863_v1 = vadd.f32 %v862_v0, %v861_v63  ;;  %v482_v3 = vadd.f32 %v860_v62, %v1202_v2 }
  0xfc   :  { %v485_v11 = vadd.f32 %v863_v1, %v1202_v2 }
  0xfe   :  { %v864_v4 = vpop.f32.mrb[4].mxu0 }
  0xff   :  { %v865_v5 = vpop.f32.mrb[5].mxu0 }
 0x100   :  { %v578_v6 = vpop.f32.mrb[0].mxu1  ;;  %v866_v7 = vadd.f32 %v865_v5, %v864_v4  ;;  %v867_v8 = vpop.f32.mrb[6].mxu0 }
 0x101   :  { %v579_v9 = vadd.f32 %v578_v6, %v482_v3  ;;  %v580_v10 = vpop.f32.mrb[1].mxu1  ;;  %v868_v12 = vpop.f32.mrb[7].mxu0 }
 0x102   :  { %v581_v13 = vpop.f32.mrb[2].mxu1  ;;  %v869_v14 = vadd.f32 %v868_v12, %v867_v8  ;;  %v490_v20 = vadd.f32 %v866_v7, %v1202_v2 }
 0x103   :  { %v641_v15 = vmax.f32 %v579_v9, 0.0  ;;  %v582_v16 = vadd.f32 %v581_v13, %v485_v11  ;;  %v583_v17 = vpop.f32.mrb[3].mxu1 }
 0x104   :  { %v493_v29 = vadd.f32 %v869_v14, %v1202_v2 }
 0x105   :  { %v826_v18 = vpack.c.bf16 %v641_v15, %v641_v15  ;;  %v642_v19 = vmax.f32 %v582_v16, 0.0 }
 0x106   :  { %v870_v21 = vpop.f32.mrb[8].mxu0 }
 0x107   :  { %722 = vst.msk [vmem:[%s1287_s3] sm:$0xf] %vm721_vm1, %v826_v18  ;;  %v827_v22 = vpack.c.bf16 %v642_v19, %v642_v19  ;;  %v871_v23 = vpop.f32.mrb[9].mxu0 }
 0x108   :  { %v586_v24 = vpop.f32.mrb[4].mxu1  ;;  %v872_v25 = vadd.f32 %v871_v23, %v870_v21  ;;  %v873_v26 = vpop.f32.mrb[10].mxu0 }
 0x109   :  { %723 = vst.msk [vmem:[%s1287_s3 + $0x4] sm:$0xf] %vm721_vm1, %v827_v22  ;;  %v587_v27 = vadd.f32 %v586_v24, %v490_v20  ;;  %v588_v28 = vpop.f32.mrb[5].mxu1  ;;  %v874_v30 = vpop.f32.mrb[11].mxu0 }
 0x10a   :  { %v589_v31 = vpop.f32.mrb[6].mxu1  ;;  %v875_v32 = vadd.f32 %v874_v30, %v873_v26  ;;  %v498_v38 = vadd.f32 %v872_v25, %v1202_v2 }
 0x10b   :  { %v643_v33 = vmax.f32 %v587_v27, 0.0  ;;  %v590_v34 = vadd.f32 %v589_v31, %v493_v29  ;;  %v591_v35 = vpop.f32.mrb[7].mxu1 }
 0x10c   :  { %v501_v47 = vadd.f32 %v875_v32, %v1202_v2 }
 0x10d   :  { %v828_v36 = vpack.c.bf16 %v643_v33, %v643_v33  ;;  %v644_v37 = vmax.f32 %v590_v34, 0.0 }
 0x10e   :  { %v876_v39 = vpop.f32.mrb[12].mxu0 }
 0x10f   :  { %724 = vst.msk [vmem:[%s1287_s3 + $0x8] sm:$0xf] %vm721_vm1, %v828_v36  ;;  %v829_v40 = vpack.c.bf16 %v644_v37, %v644_v37  ;;  %v877_v41 = vpop.f32.mrb[13].mxu0 }
 0x110   :  { %v594_v42 = vpop.f32.mrb[8].mxu1  ;;  %v878_v43 = vadd.f32 %v877_v41, %v876_v39  ;;  %v879_v44 = vpop.f32.mrb[14].mxu0 }
 0x111   :  { %725 = vst.msk [vmem:[%s1287_s3 + $0xc] sm:$0xf] %vm721_vm1, %v829_v40  ;;  %v595_v45 = vadd.f32 %v594_v42, %v498_v38  ;;  %v596_v46 = vpop.f32.mrb[9].mxu1  ;;  %v880_v48 = vpop.f32.mrb[15].mxu0 }
 0x112   :  { %v597_v49 = vpop.f32.mrb[10].mxu1  ;;  %v881_v50 = vadd.f32 %v880_v48, %v879_v44  ;;  %v506_v56 = vadd.f32 %v878_v43, %v1202_v2 }
 0x113   :  { %v645_v51 = vmax.f32 %v595_v45, 0.0  ;;  %v598_v52 = vadd.f32 %v597_v49, %v501_v47  ;;  %v599_v53 = vpop.f32.mrb[11].mxu1 }
 0x114   :  { %v509_v1 = vadd.f32 %v881_v50, %v1202_v2 }
 0x115   :  { %v830_v54 = vpack.c.bf16 %v645_v51, %v645_v51  ;;  %v646_v55 = vmax.f32 %v598_v52, 0.0 }
 0x116   :  { %v882_v57 = vpop.f32.mrb[16].mxu0 }
 0x117   :  { %726 = vst.msk [vmem:[%s1287_s3 + $0x10] sm:$0xf] %vm721_vm1, %v830_v54  ;;  %v831_v58 = vpack.c.bf16 %v646_v55, %v646_v55  ;;  %v883_v59 = vpop.f32.mrb[17].mxu0 }
 0x118   :  { %v602_v60 = vpop.f32.mrb[12].mxu1  ;;  %v884_v61 = vadd.f32 %v883_v59, %v882_v57  ;;  %v885_v62 = vpop.f32.mrb[18].mxu0 }
 0x119   :  { %727 = vst.msk [vmem:[%s1287_s3 + $0x14] sm:$0xf] %vm721_vm1, %v831_v58  ;;  %v603_v63 = vadd.f32 %v602_v60, %v506_v56  ;;  %v604_v0 = vpop.f32.mrb[13].mxu1  ;;  %v886_v3 = vpop.f32.mrb[19].mxu0 }
 0x11a   :  { %v605_v4 = vpop.f32.mrb[14].mxu1  ;;  %v887_v5 = vadd.f32 %v886_v3, %v885_v62  ;;  %v514_v11 = vadd.f32 %v884_v61, %v1202_v2 }
 0x11b   :  { %v647_v6 = vmax.f32 %v603_v63, 0.0  ;;  %v606_v7 = vadd.f32 %v605_v4, %v509_v1  ;;  %v607_v8 = vpop.f32.mrb[15].mxu1 }
 0x11c   :  { %v517_v20 = vadd.f32 %v887_v5, %v1202_v2 }
 0x11d   :  { %v832_v9 = vpack.c.bf16 %v647_v6, %v647_v6  ;;  %v648_v10 = vmax.f32 %v606_v7, 0.0 }
 0x11e   :  { %v888_v12 = vpop.f32.mrb[20].mxu0 }
 0x11f   :  { %728 = vst.msk [vmem:[%s1287_s3 + $0x18] sm:$0xf] %vm721_vm1, %v832_v9  ;;  %v833_v13 = vpack.c.bf16 %v648_v10, %v648_v10  ;;  %v889_v14 = vpop.f32.mrb[21].mxu0 }
 0x120   :  { %v610_v15 = vpop.f32.mrb[16].mxu1  ;;  %v890_v16 = vadd.f32 %v889_v14, %v888_v12  ;;  %v891_v17 = vpop.f32.mrb[22].mxu0 }
 0x121   :  { %729 = vst.msk [vmem:[%s1287_s3 + $0x1c] sm:$0xf] %vm721_vm1, %v833_v13  ;;  %v611_v18 = vadd.f32 %v610_v15, %v514_v11  ;;  %v612_v19 = vpop.f32.mrb[17].mxu1  ;;  %v892_v21 = vpop.f32.mrb[23].mxu0 }
 0x122   :  { %v613_v22 = vpop.f32.mrb[18].mxu1  ;;  %v893_v23 = vadd.f32 %v892_v21, %v891_v17  ;;  %v522_v29 = vadd.f32 %v890_v16, %v1202_v2 }
 0x123   :  { %v649_v24 = vmax.f32 %v611_v18, 0.0  ;;  %v614_v25 = vadd.f32 %v613_v22, %v517_v20  ;;  %v615_v26 = vpop.f32.mrb[19].mxu1 }
 0x124   :  { %v525_v38 = vadd.f32 %v893_v23, %v1202_v2 }
 0x125   :  { %v834_v27 = vpack.c.bf16 %v649_v24, %v649_v24  ;;  %v650_v28 = vmax.f32 %v614_v25, 0.0 }
 0x126   :  { %v894_v30 = vpop.f32.mrb[24].mxu0 }
 0x127   :  { %730 = vst.msk [vmem:[%s1287_s3 + $0x20] sm:$0xf] %vm721_vm1, %v834_v27  ;;  %v835_v31 = vpack.c.bf16 %v650_v28, %v650_v28  ;;  %v895_v32 = vpop.f32.mrb[25].mxu0 }
 0x128   :  { %v618_v33 = vpop.f32.mrb[20].mxu1  ;;  %v896_v34 = vadd.f32 %v895_v32, %v894_v30  ;;  %v897_v35 = vpop.f32.mrb[26].mxu0 }
 0x129   :  { %731 = vst.msk [vmem:[%s1287_s3 + $0x24] sm:$0xf] %vm721_vm1, %v835_v31  ;;  %v619_v36 = vadd.f32 %v618_v33, %v522_v29  ;;  %v620_v37 = vpop.f32.mrb[21].mxu1  ;;  %v898_v39 = vpop.f32.mrb[27].mxu0 }
 0x12a   :  { %v621_v40 = vpop.f32.mrb[22].mxu1  ;;  %v899_v41 = vadd.f32 %v898_v39, %v897_v35  ;;  %v530_v47 = vadd.f32 %v896_v34, %v1202_v2 }
 0x12b   :  { %v651_v42 = vmax.f32 %v619_v36, 0.0  ;;  %v622_v43 = vadd.f32 %v621_v40, %v525_v38  ;;  %v623_v44 = vpop.f32.mrb[23].mxu1 }
 0x12c   :  { %v533_v56 = vadd.f32 %v899_v41, %v1202_v2 }
 0x12d   :  { %v836_v45 = vpack.c.bf16 %v651_v42, %v651_v42  ;;  %v652_v46 = vmax.f32 %v622_v43, 0.0 }
 0x12e   :  { %v900_v48 = vpop.f32.mrb[28].mxu0 }
 0x12f   :  { %732 = vst.msk [vmem:[%s1287_s3 + $0x28] sm:$0xf] %vm721_vm1, %v836_v45  ;;  %v837_v49 = vpack.c.bf16 %v652_v46, %v652_v46  ;;  %v901_v50 = vpop.f32.mrb[29].mxu0 }
 0x130   :  { %v626_v51 = vpop.f32.mrb[24].mxu1  ;;  %v902_v52 = vadd.f32 %v901_v50, %v900_v48  ;;  %v903_v53 = vpop.f32.mrb[30].mxu0 }
 0x131   :  { %733 = vst.msk [vmem:[%s1287_s3 + $0x2c] sm:$0xf] %vm721_vm1, %v837_v49  ;;  %v627_v54 = vadd.f32 %v626_v51, %v530_v47  ;;  %v628_v55 = vpop.f32.mrb[25].mxu1  ;;  %v904_v57 = vpop.f32.mrb[31].mxu0 }
 0x132   :  { %v629_v58 = vpop.f32.mrb[26].mxu1  ;;  %v905_v59 = vadd.f32 %v904_v57, %v903_v53  ;;  %v538_v1 = vadd.f32 %v902_v52, %v1202_v2 }
 0x133   :  { %v653_v60 = vmax.f32 %v627_v54, 0.0  ;;  %v630_v61 = vadd.f32 %v629_v58, %v533_v56  ;;  %v631_v62 = vpop.f32.mrb[27].mxu1 }
 0x134   :  { %v541_v7 = vadd.f32 %v905_v59, %v1202_v2 }
 0x135   :  { %v838_v63 = vpack.c.bf16 %v653_v60, %v653_v60  ;;  %v654_v0 = vmax.f32 %v630_v61, 0.0 }
 0x137   :  { %734 = vst.msk [vmem:[%s1287_s3 + $0x30] sm:$0xf] %vm721_vm1, %v838_v63  ;;  %v839_v3 = vpack.c.bf16 %v654_v0, %v654_v0 }
 0x138   :  { %v634_v4 = vpop.f32.mrb[28].mxu1 }
 0x139   :  { %735 = vst.msk [vmem:[%s1287_s3 + $0x34] sm:$0xf] %vm721_vm1, %v839_v3  ;;  %v635_v5 = vadd.f32 %v634_v4, %v538_v1  ;;  %v636_v6 = vpop.f32.mrb[29].mxu1 }
 0x13a   :  { %v637_v8 = vpop.f32.mrb[30].mxu1 }
 0x13b   :  { %v655_v9 = vmax.f32 %v635_v5, 0.0  ;;  %v638_v10 = vadd.f32 %v637_v8, %v541_v7  ;;  %v639_v11 = vpop.f32.mrb[31].mxu1 }
 0x13d   :  { %v840_v12 = vpack.c.bf16 %v655_v9, %v655_v9  ;;  %v656_v13 = vmax.f32 %v638_v10, 0.0 }
 0x13f   :  { %736 = vst.msk [vmem:[%s1287_s3 + $0x38] sm:$0xf] %vm721_vm1, %v840_v12  ;;  %v841_v14 = vpack.c.bf16 %v656_v13, %v656_v13 }
 0x141   :  { %737 = vst.msk [vmem:[%s1287_s3 + $0x3c] sm:$0xf] %vm721_vm1, %v841_v14 }

// kernel: _device_forward.5
= control target key start
LH: loop header
LB: loop body
LE: loop exit
PB: predicated region body
PF: predicated region fallthrough
CT: control target
= control target key end

     0   :  { %v583_v0 = vmov 0   ;;  %vm218_vm0 = vcmask 719872   ;;  %vm243_vm1 = vcmask 1043456   ;;  %vm424_vm2 = vcmask 60416   ;;  %s815_s1 = inlined_call_operand.vmem [shape: bf16[216,8], index: 1, kind: input, shape index: {}]   ;;  %s816_s0 = inlined_call_operand.vmem [shape: bf16[128,216], index: 0, kind: input, shape index: {}]   ;;  %s817_s2 = inlined_call_operand.vmem [shape: f32[1,8], index: 2, kind: input, shape index: {}]   ;;  %s818_s3 = inlined_call_operand.vmem [shape: bf16[128,8], index: 3, kind: output, shape index: {}]  }
   0x1   :  { %247 = vmatprep.subr.bf16.mxu0 %v583_v0  ;;  %516 = vmatprep.subr.bf16.mxu1 %v583_v0  ;;  %v545_v1 = vld [vmem:[%s815_s1] sm:$0xff]   ;;  %v546_v2 = vld [vmem:[%s815_s1 + $0x8] sm:$0xff]   ;;  %v547_v3 = vld [vmem:[%s815_s1 + $0x10] sm:$0xff]  }
   0x2   :  { %248 = vmatpush1.bf16.msra.mxu0 %v545_v1  ;;  %530 = vmatpush1.bf16.msra.mxu1 %v545_v1  ;;  %v548_v4 = vld [vmem:[%s815_s1 + $0x18] sm:$0xff]   ;;  %v549_v5 = vld [vmem:[%s815_s1 + $0x20] sm:$0xff]   ;;  %v550_v8 = vld [vmem:[%s815_s1 + $0x28] sm:$0xff]  }
   0x3   :  { %249 = vmatprep.subr.bf16.mxu0 %v583_v0  ;;  %517 = vmatprep.subr.bf16.mxu1 %v583_v0  ;;  %v561_v6 = vld [vmem:[%s816_s0 + $0x4] ss:$8 sps:$4 sm:$0xff]   ;;  %v551_v9 = vld [vmem:[%s815_s1 + $0x30] sm:$0xff]   ;;  %v552_v10 = vld [vmem:[%s815_s1 + $0x38] sm:$0xff]  }
   0x4   :  { %476 = vmatprep.mubr.msk.bf16.mxu0 %vm218_vm0, %v561_v6  ;;  %v564_v7 = vld [vmem:[%s816_s0 + $0x44] ss:$8 sps:$4 sm:$0xff]   ;;  %v555_v13 = vld [vmem:[%s815_s1 + $0x50] sm:$0xff]   ;;  %v556_v14 = vld [vmem:[%s815_s1 + $0x58] sm:$0xff]  }
   0x5   :  { %480 = vmatprep.mubr.msk.bf16.mxu1 %vm218_vm0, %v564_v7  ;;  %v553_v11 = vld [vmem:[%s815_s1 + $0x40] sm:$0xff]   ;;  %v554_v12 = vld [vmem:[%s815_s1 + $0x48] sm:$0xff]   ;;  %v565_v20 = vld [vmem:[%s816_s0 + $0x14] ss:$8 sps:$4 sm:$0xff]  }
   0x6   :  { %250 = vmatpush1.bf16.msra.mxu0 %v546_v2  ;;  %531 = vmatpush1.bf16.msra.mxu1 %v546_v2  ;;  %v557_v15 = vld [vmem:[%s815_s1 + $0x60] sm:$0xff]   ;;  %v558_v16 = vld [vmem:[%s815_s1 + $0x68] ss:$0 sps:$4 sm:$0xff]   ;;  %v567_v21 = vld [vmem:[%s816_s0 + $0x54] ss:$8 sps:$4 sm:$0xff]  }
   0x7   :  { %251 = vmatprep.subr.bf16.mxu0 %v583_v0  ;;  %518 = vmatprep.subr.bf16.mxu1 %v583_v0  ;;  %v245_v17 = vsel %vm243_vm1, %v558_v16, 0  ;;  %v559_v18 = vld [vmem:[%s816_s0] ss:$8 sps:$4 sm:$0xff]   ;;  %v569_v22 = vld [vmem:[%s816_s0 + $0x10] ss:$8 sps:$4 sm:$0xff]  }
   0x8   :  { %v562_v19 = vld [vmem:[%s816_s0 + $0x40] ss:$8 sps:$4 sm:$0xff]   ;;  %v570_v23 = vld [vmem:[%s816_s0 + $0x50] ss:$8 sps:$4 sm:$0xff]   ;;  %v571_v24 = vld [vmem:[%s816_s0 + $0x24] ss:$8 sps:$4 sm:$0xff]  }
   0x9   :  { %v573_v25 = vld [vmem:[%s816_s0 + $0x64] ss:$8 sps:$4 sm:$0xff]   ;;  %v575_v26 = vld [vmem:[%s816_s0 + $0x20] ss:$8 sps:$4 sm:$0xff]   ;;  %v577_v28 = vld [vmem:[%s816_s0 + $0x34] ss:$8 sps:$4 sm:$0xff]  }
   0xa   :  { %252 = vmatpush1.bf16.msra.mxu0 %v547_v3  ;;  %532 = vmatpush1.bf16.msra.mxu1 %v547_v3  ;;  %v576_v27 = vld [vmem:[%s816_s0 + $0x60] ss:$8 sps:$4 sm:$0xff]   ;;  %v579_v29 = vld [vmem:[%s816_s0 + $0x74] ss:$8 sps:$4 sm:$0xff]   ;;  %v581_v30 = vld [vmem:[%s816_s0 + $0x30] ss:$8 sps:$4 sm:$0xff]  }
   0xb   :  { %253 = vmatprep.subr.bf16.mxu0 %v583_v0  ;;  %519 = vmatprep.subr.bf16.mxu1 %v583_v0  ;;  %v582_v31 = vld [vmem:[%s816_s0 + $0x70] ss:$8 sps:$4 sm:$0xff]   ;;  %v733_v32 = vld [vmem:[%s817_s2] ss:$0 sm:$0xff] }
   0xe   :  { %254 = vmatpush1.bf16.msra.mxu0 %v548_v4  ;;  %533 = vmatpush1.bf16.msra.mxu1 %v548_v4 }
   0xf   :  { %255 = vmatprep.subr.bf16.mxu0 %v583_v0  ;;  %520 = vmatprep.subr.bf16.mxu1 %v583_v0 }
  0x12   :  { %256 = vmatpush1.bf16.msra.mxu0 %v549_v5  ;;  %534 = vmatpush1.bf16.msra.mxu1 %v549_v5 }
  0x13   :  { %257 = vmatprep.subr.bf16.mxu0 %v583_v0  ;;  %521 = vmatprep.subr.bf16.mxu1 %v583_v0 }
  0x16   :  { %258 = vmatpush1.bf16.msra.mxu0 %v550_v8  ;;  %535 = vmatpush1.bf16.msra.mxu1 %v550_v8 }
  0x17   :  { %259 = vmatprep.subr.bf16.mxu0 %v583_v0  ;;  %522 = vmatprep.subr.bf16.mxu1 %v583_v0 }
  0x1a   :  { %260 = vmatpush1.bf16.msra.mxu0 %v551_v9  ;;  %536 = vmatpush1.bf16.msra.mxu1 %v551_v9 }
  0x1b   :  { %261 = vmatprep.subr.bf16.mxu0 %v583_v0  ;;  %523 = vmatprep.subr.bf16.mxu1 %v583_v0 }
  0x1e   :  { %262 = vmatpush1.bf16.msra.mxu0 %v552_v10  ;;  %537 = vmatpush1.bf16.msra.mxu1 %v552_v10 }
  0x1f   :  { %263 = vmatprep.subr.bf16.mxu0 %v583_v0  ;;  %524 = vmatprep.subr.bf16.mxu1 %v583_v0 }
  0x22   :  { %264 = vmatpush1.bf16.msra.mxu0 %v553_v11  ;;  %538 = vmatpush1.bf16.msra.mxu1 %v553_v11 }
  0x23   :  { %265 = vmatprep.subr.bf16.mxu0 %v583_v0  ;;  %525 = vmatprep.subr.bf16.mxu1 %v583_v0 }
  0x26   :  { %266 = vmatpush1.bf16.msra.mxu0 %v554_v12  ;;  %539 = vmatpush1.bf16.msra.mxu1 %v554_v12 }
  0x27   :  { %267 = vmatprep.subr.bf16.mxu0 %v583_v0  ;;  %526 = vmatprep.subr.bf16.mxu1 %v583_v0 }
  0x2a   :  { %268 = vmatpush1.bf16.msra.mxu0 %v555_v13  ;;  %540 = vmatpush1.bf16.msra.mxu1 %v555_v13 }
  0x2b   :  { %269 = vmatprep.subr.bf16.mxu0 %v583_v0  ;;  %527 = vmatprep.subr.bf16.mxu1 %v583_v0 }
  0x2e   :  { %270 = vmatpush1.bf16.msra.mxu0 %v556_v14  ;;  %541 = vmatpush1.bf16.msra.mxu1 %v556_v14 }
  0x2f   :  { %271 = vmatprep.subr.bf16.mxu0 %v583_v0  ;;  %528 = vmatprep.subr.bf16.mxu1 %v583_v0 }
  0x32   :  { %272 = vmatpush1.bf16.msra.mxu0 %v557_v15  ;;  %542 = vmatpush1.bf16.msra.mxu1 %v557_v15 }
  0x33   :  { %273 = vmatprep.subr.bf16.mxu0 %v583_v0  ;;  %529 = vmatprep.subr.bf16.mxu1 %v583_v0 }
  0x36   :  { %274 = vmatpush1.bf16.msra.mxu0 %v245_v17  ;;  %543 = vmatpush1.bf16.msra.mxu1 %v245_v17 }
  0x39   :  { %280 = vmatmul.mubr.bf16.vlgmr.msra.gmra.mrb[0].mxu0 %v559_v18  ;;  %312 = vmatmul.mubr.bf16.vlgmr.msra.gmra.mrb[0].mxu1 %v562_v19 }
  0x3a   :  { %477 = vmatprep.mubr.msk.bf16.mxu0 %vm218_vm0, %v565_v20  ;;  %481 = vmatprep.mubr.msk.bf16.mxu1 %vm218_vm0, %v567_v21 }
  0x41   :  { %288 = vmatmul.mubr.bf16.gmra.mrb[4].mxu0 %v569_v22  ;;  %320 = vmatmul.mubr.bf16.gmra.mrb[4].mxu1 %v570_v23 }
  0x42   :  { %478 = vmatprep.mubr.msk.bf16.mxu0 %vm218_vm0, %v571_v24  ;;  %482 = vmatprep.mubr.msk.bf16.mxu1 %vm218_vm0, %v573_v25 }
  0x49   :  { %296 = vmatmul.mubr.bf16.gmra.mrb[8].mxu0 %v575_v26  ;;  %328 = vmatmul.mubr.bf16.gmra.mrb[8].mxu1 %v576_v27 }
  0x4a   :  { %479 = vmatprep.mubr.msk.bf16.mxu0 %vm218_vm0, %v577_v28  ;;  %483 = vmatprep.mubr.msk.bf16.mxu1 %vm218_vm0, %v579_v29 }
  0x51   :  { %304 = vmatmul.mubr.bf16.gmra.mrb[12].mxu0 %v581_v30  ;;  %336 = vmatmul.mubr.bf16.gmra.mrb[12].mxu1 %v582_v31 }
 0x10c   :  { %v281_v33 = vpop.f32.mrb[0].mxu0  ;;  %v313_v34 = vpop.f32.mrb[0].mxu1 }
 0x10d   :  { %v282_v35 = vadd.f32 %v733_v32, %v281_v33  ;;  %v314_v36 = vadd.f32 %v733_v32, %v313_v34  ;;  %v283_v37 = vpop.f32.mrb[1].mxu0  ;;  %v315_v38 = vpop.f32.mrb[1].mxu1 }
 0x10e   :  { %v284_v39 = vpop.f32.mrb[2].mxu0  ;;  %v316_v40 = vpop.f32.mrb[2].mxu1 }
 0x10f   :  { %v344_v41 = vmax.f32 %v282_v35, 0.0  ;;  %v352_v42 = vmax.f32 %v314_v36, 0.0  ;;  %v285_v43 = vadd.f32 %v733_v32, %v284_v39  ;;  %v317_v44 = vadd.f32 %v733_v32, %v316_v40  ;;  %v286_v45 = vpop.f32.mrb[3].mxu0  ;;  %v318_v46 = vpop.f32.mrb[3].mxu1 }
 0x111   :  { %v500_v47 = vpack.c.bf16 %v344_v41, %v344_v41  ;;  %v508_v48 = vpack.c.bf16 %v352_v42, %v352_v42  ;;  %v345_v49 = vmax.f32 %v285_v43, 0.0  ;;  %v353_v50 = vmax.f32 %v317_v44, 0.0 }
 0x113   :  { %425 = vst.msk [vmem:[%s818_s3] sm:$0xf] %vm424_vm2, %v500_v47  ;;  %433 = vst.msk [vmem:[%s818_s3 + $0x20] sm:$0xf] %vm424_vm2, %v508_v48  ;;  %v501_v51 = vpack.c.bf16 %v345_v49, %v345_v49  ;;  %v509_v52 = vpack.c.bf16 %v353_v50, %v353_v50 }
 0x114   :  { %v289_v53 = vpop.f32.mrb[4].mxu0  ;;  %v321_v54 = vpop.f32.mrb[4].mxu1 }
 0x115   :  { %426 = vst.msk [vmem:[%s818_s3 + $0x4] sm:$0xf] %vm424_vm2, %v501_v51  ;;  %434 = vst.msk [vmem:[%s818_s3 + $0x24] sm:$0xf] %vm424_vm2, %v509_v52  ;;  %v290_v55 = vadd.f32 %v733_v32, %v289_v53  ;;  %v322_v56 = vadd.f32 %v733_v32, %v321_v54  ;;  %v291_v57 = vpop.f32.mrb[5].mxu0  ;;  %v323_v58 = vpop.f32.mrb[5].mxu1 }
 0x116   :  { %v292_v59 = vpop.f32.mrb[6].mxu0  ;;  %v324_v60 = vpop.f32.mrb[6].mxu1 }
 0x117   :  { %v346_v61 = vmax.f32 %v290_v55, 0.0  ;;  %v354_v62 = vmax.f32 %v322_v56, 0.0  ;;  %v293_v63 = vadd.f32 %v733_v32, %v292_v59  ;;  %v325_v0 = vadd.f32 %v733_v32, %v324_v60  ;;  %v294_v1 = vpop.f32.mrb[7].mxu0  ;;  %v326_v2 = vpop.f32.mrb[7].mxu1 }
 0x119   :  { %v502_v3 = vpack.c.bf16 %v346_v61, %v346_v61  ;;  %v510_v4 = vpack.c.bf16 %v354_v62, %v354_v62  ;;  %v347_v5 = vmax.f32 %v293_v63, 0.0  ;;  %v355_v6 = vmax.f32 %v325_v0, 0.0 }
 0x11b   :  { %427 = vst.msk [vmem:[%s818_s3 + $0x8] sm:$0xf] %vm424_vm2, %v502_v3  ;;  %435 = vst.msk [vmem:[%s818_s3 + $0x28] sm:$0xf] %vm424_vm2, %v510_v4  ;;  %v503_v7 = vpack.c.bf16 %v347_v5, %v347_v5  ;;  %v511_v8 = vpack.c.bf16 %v355_v6, %v355_v6 }
 0x11c   :  { %v297_v9 = vpop.f32.mrb[8].mxu0  ;;  %v329_v10 = vpop.f32.mrb[8].mxu1 }
 0x11d   :  { %428 = vst.msk [vmem:[%s818_s3 + $0xc] sm:$0xf] %vm424_vm2, %v503_v7  ;;  %436 = vst.msk [vmem:[%s818_s3 + $0x2c] sm:$0xf] %vm424_vm2, %v511_v8  ;;  %v298_v11 = vadd.f32 %v733_v32, %v297_v9  ;;  %v330_v12 = vadd.f32 %v733_v32, %v329_v10  ;;  %v299_v13 = vpop.f32.mrb[9].mxu0  ;;  %v331_v14 = vpop.f32.mrb[9].mxu1 }
 0x11e   :  { %v300_v15 = vpop.f32.mrb[10].mxu0  ;;  %v332_v16 = vpop.f32.mrb[10].mxu1 }
 0x11f   :  { %v348_v17 = vmax.f32 %v298_v11, 0.0  ;;  %v356_v18 = vmax.f32 %v330_v12, 0.0  ;;  %v301_v19 = vadd.f32 %v733_v32, %v300_v15  ;;  %v333_v20 = vadd.f32 %v733_v32, %v332_v16  ;;  %v302_v21 = vpop.f32.mrb[11].mxu0  ;;  %v334_v22 = vpop.f32.mrb[11].mxu1 }
 0x121   :  { %v504_v23 = vpack.c.bf16 %v348_v17, %v348_v17  ;;  %v512_v24 = vpack.c.bf16 %v356_v18, %v356_v18  ;;  %v349_v25 = vmax.f32 %v301_v19, 0.0  ;;  %v357_v26 = vmax.f32 %v333_v20, 0.0 }
 0x123   :  { %429 = vst.msk [vmem:[%s818_s3 + $0x10] sm:$0xf] %vm424_vm2, %v504_v23  ;;  %437 = vst.msk [vmem:[%s818_s3 + $0x30] sm:$0xf] %vm424_vm2, %v512_v24  ;;  %v505_v27 = vpack.c.bf16 %v349_v25, %v349_v25  ;;  %v513_v28 = vpack.c.bf16 %v357_v26, %v357_v26 }
 0x124   :  { %v305_v29 = vpop.f32.mrb[12].mxu0  ;;  %v337_v30 = vpop.f32.mrb[12].mxu1 }
 0x125   :  { %430 = vst.msk [vmem:[%s818_s3 + $0x14] sm:$0xf] %vm424_vm2, %v505_v27  ;;  %438 = vst.msk [vmem:[%s818_s3 + $0x34] sm:$0xf] %vm424_vm2, %v513_v28  ;;  %v306_v31 = vadd.f32 %v733_v32, %v305_v29  ;;  %v338_v33 = vadd.f32 %v733_v32, %v337_v30  ;;  %v307_v34 = vpop.f32.mrb[13].mxu0  ;;  %v339_v35 = vpop.f32.mrb[13].mxu1 }
 0x126   :  { %v308_v36 = vpop.f32.mrb[14].mxu0  ;;  %v340_v37 = vpop.f32.mrb[14].mxu1 }
 0x127   :  { %v350_v38 = vmax.f32 %v306_v31, 0.0  ;;  %v358_v39 = vmax.f32 %v338_v33, 0.0  ;;  %v309_v40 = vadd.f32 %v733_v32, %v308_v36  ;;  %v341_v41 = vadd.f32 %v733_v32, %v340_v37  ;;  %v310_v42 = vpop.f32.mrb[15].mxu0  ;;  %v342_v43 = vpop.f32.mrb[15].mxu1 }
 0x129   :  { %v506_v44 = vpack.c.bf16 %v350_v38, %v350_v38  ;;  %v514_v45 = vpack.c.bf16 %v358_v39, %v358_v39  ;;  %v351_v46 = vmax.f32 %v309_v40, 0.0  ;;  %v359_v47 = vmax.f32 %v341_v41, 0.0 }
 0x12b   :  { %431 = vst.msk [vmem:[%s818_s3 + $0x18] sm:$0xf] %vm424_vm2, %v506_v44  ;;  %439 = vst.msk [vmem:[%s818_s3 + $0x38] sm:$0xf] %vm424_vm2, %v514_v45  ;;  %v507_v48 = vpack.c.bf16 %v351_v46, %v351_v46  ;;  %v515_v49 = vpack.c.bf16 %v359_v47, %v359_v47 }
 0x12d   :  { %432 = vst.msk [vmem:[%s818_s3 + $0x1c] sm:$0xf] %vm424_vm2, %v507_v48  ;;  %440 = vst.msk [vmem:[%s818_s3 + $0x3c] sm:$0xf] %vm424_vm2, %v515_v49 }

// kernel: _device_forward.6
= control target key start
LH: loop header
LB: loop body
LE: loop exit
PB: predicated region body
PF: predicated region fallthrough
CT: control target
= control target key end

     0   :  { %vm114_vm0 = vcmask 588800   ;;  %vm139_vm1 = vcmask 1043456   ;;  %vm320_vm2 = vcmask 60416   ;;  %s593_s1 = inlined_call_operand.vmem [shape: bf16[72,8], index: 1, kind: input, shape index: {}]   ;;  %s594_s0 = inlined_call_operand.vmem [shape: bf16[128,72], index: 0, kind: input, shape index: {}]   ;;  %s595_s2 = inlined_call_operand.vmem [shape: f32[1,8], index: 2, kind: input, shape index: {}]   ;;  %s596_s3 = inlined_call_operand.vmem [shape: bf16[128,8], index: 3, kind: output, shape index: {}]  }
   0x1   :  { %v446_v0 = vld [vmem:[%s593_s1] sm:$0xff]   ;;  %v447_v1 = vld [vmem:[%s593_s1 + $0x8] sm:$0xff]   ;;  %v448_v2 = vld [vmem:[%s593_s1 + $0x10] sm:$0xff]  }
   0x2   :  { %408 = vmatprep.subr.bf16.mxu0 %v446_v0  ;;  %434 = vmatprep.subr.bf16.mxu1 %v446_v0  ;;  %v451_v3 = vld [vmem:[%s594_s0] sm:$0xff]   ;;  %v449_v5 = vld [vmem:[%s593_s1 + $0x18] sm:$0xff]   ;;  %v453_v8 = vld [vmem:[%s594_s0 + $0x8] sm:$0xff]  }
   0x3   :  { %409 = vmatpush3.bf16.msra.mxu0 %v446_v0  ;;  %439 = vmatpush3.bf16.msra.mxu1 %v446_v0  ;;  %v452_v4 = vld [vmem:[%s594_s0 + $0x20] sm:$0xff]   ;;  %v454_v9 = vld [vmem:[%s594_s0 + $0x28] sm:$0xff]   ;;  %v455_v10 = vld [vmem:[%s594_s0 + $0x10] sm:$0xff]  }
   0x4   :  { %410 = vmatprep.subr.bf16.mxu0 %v447_v1  ;;  %435 = vmatprep.subr.bf16.mxu1 %v447_v1  ;;  %v450_v6 = vld [vmem:[%s593_s1 + $0x20] ss:$0 sps:$4 sm:$0xff]   ;;  %v456_v11 = vld [vmem:[%s594_s0 + $0x30] sm:$0xff]   ;;  %v457_v12 = vld [vmem:[%s594_s0 + $0x18] sm:$0xff]  }
   0x5   :  { %418 = vmatprep.mubr.msk.bf16.mxu0 %vm114_vm0, %v451_v3  ;;  %426 = vmatprep.mubr.msk.bf16.mxu1 %vm114_vm0, %v452_v4  ;;  %v141_v7 = vsel %vm139_vm1, %v450_v6, 0  ;;  %v458_v13 = vld [vmem:[%s594_s0 + $0x38] sm:$0xff]   ;;  %v341_v14 = vld [vmem:[%s595_s2] ss:$0 sm:$0xff] }
   0x7   :  { %411 = vmatpush3.bf16.msra.mxu0 %v447_v1  ;;  %440 = vmatpush3.bf16.msra.mxu1 %v447_v1 }
   0x8   :  { %412 = vmatprep.subr.bf16.mxu0 %v448_v2  ;;  %436 = vmatprep.subr.bf16.mxu1 %v448_v2 }
   0xb   :  { %413 = vmatpush3.bf16.msra.mxu0 %v448_v2  ;;  %441 = vmatpush3.bf16.msra.mxu1 %v448_v2 }
   0xc   :  { %414 = vmatprep.subr.bf16.mxu0 %v449_v5  ;;  %437 = vmatprep.subr.bf16.mxu1 %v449_v5 }
   0xf   :  { %415 = vmatpush3.bf16.msra.mxu0 %v449_v5  ;;  %442 = vmatpush3.bf16.msra.mxu1 %v449_v5 }
  0x10   :  { %444 = vmatprep.subr.msk.bf16.mxu0 %vm139_vm1, %v450_v6  ;;  %445 = vmatprep.subr.msk.bf16.mxu1 %vm139_vm1, %v450_v6 }
  0x13   :  { %417 = vmatpush3.bf16.msra.mxu0 %v141_v7  ;;  %443 = vmatpush3.bf16.msra.mxu1 %v141_v7 }
  0x16   :  { %419 = vmatmul.mubr.msk.bf16.vlgmr.msra.gmra.mrb[0].mxu0 %vm114_vm0, %v453_v8  ;;  %427 = vmatmul.mubr.msk.bf16.vlgmr.msra.gmra.mrb[0].mxu1 %vm114_vm0, %v454_v9 }
  0x17   :  { %422 = vmatprep.mubr.msk.bf16.mxu0 %vm114_vm0, %v455_v10  ;;  %430 = vmatprep.mubr.msk.bf16.mxu1 %vm114_vm0, %v456_v11 }
  0x1e   :  { %423 = vmatmul.mubr.msk.bf16.gmra.mrb[4].mxu0 %vm114_vm0, %v457_v12  ;;  %431 = vmatmul.mubr.msk.bf16.gmra.mrb[4].mxu1 %vm114_vm0, %v458_v13 }
  0xe9   :  { %v420_v15 = vpop.f32.mrb[0].mxu0  ;;  %v428_v16 = vpop.f32.mrb[0].mxu1 }
  0xea   :  { %v186_v17 = vadd.f32 %v420_v15, %v341_v14  ;;  %v218_v18 = vadd.f32 %v428_v16, %v341_v14  ;;  %v177_v19 = vpop.f32.mrb[1].mxu0  ;;  %v209_v20 = vpop.f32.mrb[1].mxu1 }
  0xeb   :  { %v178_v21 = vadd.f32 %v341_v14, %v177_v19  ;;  %v210_v22 = vadd.f32 %v341_v14, %v209_v20  ;;  %v421_v23 = vpop.f32.mrb[2].mxu0  ;;  %v429_v24 = vpop.f32.mrb[2].mxu1 }
  0xec   :  { %v242_v25 = vmax.f32 %v186_v17, 0.0  ;;  %v250_v26 = vmax.f32 %v218_v18, 0.0  ;;  %v189_v27 = vadd.f32 %v421_v23, %v341_v14  ;;  %v221_v28 = vadd.f32 %v429_v24, %v341_v14  ;;  %v180_v29 = vpop.f32.mrb[3].mxu0  ;;  %v212_v30 = vpop.f32.mrb[3].mxu1 }
  0xed   :  { %v240_v31 = vmax.f32 %v178_v21, 0.0  ;;  %v248_v32 = vmax.f32 %v210_v22, 0.0  ;;  %v181_v33 = vadd.f32 %v341_v14, %v180_v29  ;;  %v213_v34 = vadd.f32 %v341_v14, %v212_v30 }
  0xee   :  { %v381_v35 = vpack.c.bf16 %v242_v25, %v242_v25  ;;  %v389_v36 = vpack.c.bf16 %v250_v26, %v250_v26  ;;  %v243_v37 = vmax.f32 %v189_v27, 0.0  ;;  %v251_v38 = vmax.f32 %v221_v28, 0.0 }
  0xef   :  { %v379_v39 = vpack.c.bf16 %v240_v31, %v240_v31  ;;  %v387_v40 = vpack.c.bf16 %v248_v32, %v248_v32  ;;  %v241_v41 = vmax.f32 %v181_v33, 0.0  ;;  %v249_v42 = vmax.f32 %v213_v34, 0.0 }
  0xf0   :  { %323 = vst.msk [vmem:[%s596_s3 + $0x8] sm:$0xf] %vm320_vm2, %v381_v35  ;;  %331 = vst.msk [vmem:[%s596_s3 + $0x28] sm:$0xf] %vm320_vm2, %v389_v36  ;;  %v382_v43 = vpack.c.bf16 %v243_v37, %v243_v37  ;;  %v390_v44 = vpack.c.bf16 %v251_v38, %v251_v38 }
  0xf1   :  { %321 = vst.msk [vmem:[%s596_s3] sm:$0xf] %vm320_vm2, %v379_v39  ;;  %329 = vst.msk [vmem:[%s596_s3 + $0x20] sm:$0xf] %vm320_vm2, %v387_v40  ;;  %v380_v45 = vpack.c.bf16 %v241_v41, %v241_v41  ;;  %v388_v46 = vpack.c.bf16 %v249_v42, %v249_v42  ;;  %v424_v47 = vpop.f32.mrb[4].mxu0  ;;  %v432_v48 = vpop.f32.mrb[4].mxu1 }
  0xf2   :  { %324 = vst.msk [vmem:[%s596_s3 + $0xc] sm:$0xf] %vm320_vm2, %v382_v43  ;;  %332 = vst.msk [vmem:[%s596_s3 + $0x2c] sm:$0xf] %vm320_vm2, %v390_v44  ;;  %v202_v49 = vadd.f32 %v424_v47, %v341_v14  ;;  %v234_v50 = vadd.f32 %v432_v48, %v341_v14  ;;  %v193_v51 = vpop.f32.mrb[5].mxu0  ;;  %v225_v52 = vpop.f32.mrb[5].mxu1 }
  0xf3   :  { %322 = vst.msk [vmem:[%s596_s3 + $0x4] sm:$0xf] %vm320_vm2, %v380_v45  ;;  %330 = vst.msk [vmem:[%s596_s3 + $0x24] sm:$0xf] %vm320_vm2, %v388_v46  ;;  %v194_v53 = vadd.f32 %v341_v14, %v193_v51  ;;  %v226_v54 = vadd.f32 %v341_v14, %v225_v52  ;;  %v425_v55 = vpop.f32.mrb[6].mxu0  ;;  %v433_v56 = vpop.f32.mrb[6].mxu1 }
  0xf4   :  { %v246_v57 = vmax.f32 %v202_v49, 0.0  ;;  %v254_v58 = vmax.f32 %v234_v50, 0.0  ;;  %v205_v59 = vadd.f32 %v425_v55, %v341_v14  ;;  %v237_v60 = vadd.f32 %v433_v56, %v341_v14  ;;  %v196_v61 = vpop.f32.mrb[7].mxu0  ;;  %v228_v62 = vpop.f32.mrb[7].mxu1 }
  0xf5   :  { %v244_v63 = vmax.f32 %v194_v53, 0.0  ;;  %v252_v0 = vmax.f32 %v226_v54, 0.0  ;;  %v197_v1 = vadd.f32 %v341_v14, %v196_v61  ;;  %v229_v2 = vadd.f32 %v341_v14, %v228_v62 }
  0xf6   :  { %v385_v3 = vpack.c.bf16 %v246_v57, %v246_v57  ;;  %v393_v4 = vpack.c.bf16 %v254_v58, %v254_v58  ;;  %v247_v5 = vmax.f32 %v205_v59, 0.0  ;;  %v255_v6 = vmax.f32 %v237_v60, 0.0 }
  0xf7   :  { %v383_v7 = vpack.c.bf16 %v244_v63, %v244_v63  ;;  %v391_v8 = vpack.c.bf16 %v252_v0, %v252_v0  ;;  %v245_v9 = vmax.f32 %v197_v1, 0.0  ;;  %v253_v10 = vmax.f32 %v229_v2, 0.0 }
  0xf8   :  { %327 = vst.msk [vmem:[%s596_s3 + $0x18] sm:$0xf] %vm320_vm2, %v385_v3  ;;  %335 = vst.msk [vmem:[%s596_s3 + $0x38] sm:$0xf] %vm320_vm2, %v393_v4  ;;  %v386_v11 = vpack.c.bf16 %v247_v5, %v247_v5  ;;  %v394_v12 = vpack.c.bf16 %v255_v6, %v255_v6 }
  0xf9   :  { %325 = vst.msk [vmem:[%s596_s3 + $0x10] sm:$0xf] %vm320_vm2, %v383_v7  ;;  %333 = vst.msk [vmem:[%s596_s3 + $0x30] sm:$0xf] %vm320_vm2, %v391_v8  ;;  %v384_v13 = vpack.c.bf16 %v245_v9, %v245_v9  ;;  %v392_v14 = vpack.c.bf16 %v253_v10, %v253_v10 }
  0xfa   :  { %328 = vst.msk [vmem:[%s596_s3 + $0x1c] sm:$0xf] %vm320_vm2, %v386_v11  ;;  %336 = vst.msk [vmem:[%s596_s3 + $0x3c] sm:$0xf] %vm320_vm2, %v394_v12 }
  0xfb   :  { %326 = vst.msk [vmem:[%s596_s3 + $0x14] sm:$0xf] %vm320_vm2, %v384_v13  ;;  %334 = vst.msk [vmem:[%s596_s3 + $0x34] sm:$0xf] %vm320_vm2, %v392_v14 }

</bundles_post_ra>
